<compile_context>
chip_gen: v7x
topology: tpu7x:2x2x1
jax: 0.10.0
libtpu: 0.0.40
codegen_flags: <defaults>
</compile_context>

<pallas_src>
import functools

import jax
import jax.numpy as jnp
from jax.experimental import pallas as pl
from jax.experimental.pallas import tpu as pltpu

LN_EPS = 1e-5


def _layer_norm(v, gamma, beta):
    # Two-pass (centered) statistics in f32 + rsqrt; matches the reference form.
    inv_n = 1.0 / v.shape[-1]
    mean = jnp.sum(v, axis=-1, keepdims=True) * inv_n
    xc = v - mean
    var = jnp.sum(xc * xc, axis=-1, keepdims=True) * inv_n
    return xc * jax.lax.rsqrt(var + LN_EPS) * gamma + beta


# ---------------------------------------------------------------------------
# Fused kernel: one-hot embed (MXU) -> LN -> mask -> [roll-conv + LN + ReLU] xL
# ---------------------------------------------------------------------------
def _fused_encoder_kernel(len_ref,                    # SMEM (B,) scalar prefetch
                          text_ref,                   # (Bb*T, 1) int32 token ids
                          tab_ref,                    # (Vp, E) embedding table
                          eg_ref, eb_ref,             # (1, E) embed-LN params
                          w_ref,                      # (L, K, E, E) conv weights
                          b_ref, g_ref, bt_ref,       # (L, E) bias / LN params
                          o_ref,                      # (Bb, E, T) output (NCT)
                          *, n_layers, ksize, block_b, seq_len, compute_dtype):
    T, Bb = seq_len, block_b
    M = Bb * T                                        # MXU rows = whole batch block
    Vp, E = tab_ref.shape
    pad_left = (ksize - 1) // 2                       # tf SAME-pad convention
    f32 = jnp.float32

    # --- in-kernel embedding gather: one-hot (M, Vp) @ table (Vp, E) on MXU ---
    # No (B, T, E) HBM-materialised gather; the table is VMEM-resident and
    # grid-invariant.  For very large vocab*E switch to pl.ANY + DMA row gather.
    ids = text_ref[...]                                           # (M, 1) int32
    onehot = jax.lax.broadcasted_iota(jnp.int32, (M, Vp), 1) == ids
    x = jnp.dot(onehot.astype(compute_dtype), tab_ref[...],
                preferred_element_type=f32)                       # (M, E) f32

    # --- TextEmbed LayerNorm --------------------------------------------------
    x = _layer_norm(x, eg_ref[...].astype(f32), eb_ref[...].astype(f32))

    # --- masks from scalar-prefetched lengths (no HBM mask tensor) ------------
    blk = pl.program_id(0)
    pos = jax.lax.broadcasted_iota(jnp.int32, (M, 1), 0)          # flat row id
    seq_mask = jnp.zeros((M, 1), f32)
    for bb in range(Bb):                                          # static, tiny
        start = bb * T
        ln = len_ref[blk * Bb + bb]
        seq_mask = jnp.where((pos >= start) & (pos < start + ln), 1.0, seq_mask)
    x = x * seq_mask                                              # use_conv_mask

    # Per-tap masks zeroing rows a roll wraps across sequence boundaries.
    # Static constants, hoisted out of the layer loop (shared by all layers).
    def tap_mask(shift):
        if shift == 0:
            return None
        good = jnp.ones((M, 1), f32)
        for bb in range(Bb):
            start = bb * T
            if shift > 0:
                wrapped = (pos >= start) & (pos < start + shift)
            else:
                wrapped = (pos >= start + T + shift) & (pos < start + T)
            good = jnp.where(wrapped, 0.0, good)
        return good

    tap_masks = [tap_mask(pad_left - k) for k in range(ksize)]

    bias_all = b_ref[...].astype(f32)                             # (L, E)
    gamma_all = g_ref[...].astype(f32)
    beta_all = bt_ref[...].astype(f32)

    # --- conv stack: K rolled taps (XLU) -> K accumulated MXU dots per layer --
    # No concat-based padding / im2col, so no per-layer relayout copies and no
    # (T, K*E) operand blow-up; activations stay resident in vregs/VMEM.
    for l in range(n_layers):                                     # static, tiny
        acc = None
        for k in range(ksize):
            s = pad_left - k                                      # row shift
            if s == 0:
                xk = x
            else:
                xk = pltpu.roll(x, shift=s % M, axis=0) * tap_masks[k]
            d = jnp.dot(xk.astype(compute_dtype), w_ref[l, k],
                        preferred_element_type=f32)               # (M, E) f32
            acc = d if acc is None else acc + d
        acc = acc + bias_all[l:l + 1, :]
        y = _layer_norm(acc, gamma_all[l:l + 1, :], beta_all[l:l + 1, :])
        x = jnp.maximum(y, 0.0) * seq_mask                        # ReLU + mask

    # --- emit already transposed (B, E, T): removes the wrapper NTC->NCT
    #     transpose (an extra output-sized HBM round trip); T is the lane dim.
    for bb in range(Bb):                                          # static, tiny
        o_ref[bb] = x[bb * T:(bb + 1) * T, :].T.astype(o_ref.dtype)


def _fused_forward(lengths, text2d, table, eg, eb, w_all, b_all, g_all, bt_all,
                   *, batch, seq_len, block_b, ksize, compute_dtype, out_dtype):
    B, T, Bb = batch, seq_len, block_b
    Vp, E = table.shape
    L = w_all.shape[0]
    kernel = functools.partial(_fused_encoder_kernel, n_layers=L, ksize=ksize,
                               block_b=Bb, seq_len=T, compute_dtype=compute_dtype)
    # NOTE: the parameter inputs below are grid-invariant; at grid sizes > 1
    # they would ideally be single-buffered (pipeline_mode=pl.Buffered(1)) to
    # save VMEM -- left at the default here for lowering simplicity.
    # TODO(synk): production-length T needs a (batch, T-tile) grid with an
    # n_layers*(ksize-1)-row halo plus vmem_limit_bytes (v7x/v5e VMEM budgets).
    return pl.pallas_call(
        kernel,
        out_shape=jax.ShapeDtypeStruct((B, E, T), out_dtype),
        grid_spec=pltpu.PrefetchScalarGridSpec(
            num_scalar_prefetch=1,                    # lengths -> SMEM
            grid=(B // Bb,),
            in_specs=[
                pl.BlockSpec((Bb * T, 1), lambda i, lens: (i, 0)),
                pl.BlockSpec((Vp, E), lambda i, lens: (0, 0)),
                pl.BlockSpec((1, E), lambda i, lens: (0, 0)),
                pl.BlockSpec((1, E), lambda i, lens: (0, 0)),
                pl.BlockSpec((L, ksize, E, E), lambda i, lens: (0, 0, 0, 0)),
                pl.BlockSpec((L, E), lambda i, lens: (0, 0)),
                pl.BlockSpec((L, E), lambda i, lens: (0, 0)),
                pl.BlockSpec((L, E), lambda i, lens: (0, 0)),
            ],
            out_specs=pl.BlockSpec((Bb, E, T), lambda i, lens: (i, 0, 0)),
        ),
        compiler_params=pltpu.CompilerParams(
            dimension_semantics=("parallel",)),
    )(lengths, text2d, table, eg, eb, w_all, b_all, g_all, bt_all)


# ---------------------------------------------------------------------------
# Forward pass (Pallas) and pure-JAX f32 reference
# ---------------------------------------------------------------------------
def forward(text, lengths, params, *, max_output_len=None,
            compute_dtype=jnp.bfloat16, out_dtype=jnp.float32, block_b=None):
    """Returns (output[B, C, T_out], lengths, None), matching the torch module."""
    B, T = text.shape
    vocab, E = params["embed"].shape
    layers = params["conv_layers"]
    K = layers[0]["w"].shape[0]
    Bb = B if block_b is None else block_b
    assert B % Bb == 0, "block_b must divide the batch size"

    # Pad the vocab dim of the table so the one-hot contraction is MXU/lane
    # friendly; padded rows are never selected (ids < vocab).  Table feeds the
    # MXU in compute_dtype (bf16 fast path) and stays resident in VMEM.
    Vp = max(128, ((vocab + 127) // 128) * 128)
    table = jnp.pad(params["embed"].astype(compute_dtype),
                    ((0, Vp - vocab), (0, 0)))
    text2d = text.reshape(B * T, 1).astype(jnp.int32)             # tiny

    # Stack per-layer conv params once; weights feed the MXU in compute_dtype;
    # biases / LN parameters stay f32.
    w_all = jnp.stack([l["w"] for l in layers]).astype(compute_dtype)   # (L,K,E,E)
    b_all = jnp.stack([l["b"].reshape(E) for l in layers]).astype(jnp.float32)
    g_all = jnp.stack([l["gamma"].reshape(E) for l in layers]).astype(jnp.float32)
    bt_all = jnp.stack([l["beta"].reshape(E) for l in layers]).astype(jnp.float32)

    out = _fused_forward(lengths.astype(jnp.int32), text2d, table,
                         params["embed_gamma"].astype(jnp.float32),
                         params["embed_beta"].astype(jnp.float32),
                         w_all, b_all, g_all, bt_all,
                         batch=B, seq_len=T, block_b=Bb, ksize=K,
                         compute_dtype=compute_dtype, out_dtype=out_dtype)

    # match_output_len: static narrow of the (lane) time dim; stays jittable.
    if max_output_len is not None and max_output_len != T:
        out = out[:, :, :max_output_len]
    return out, lengths, None


def ref_forward(text, lengths, params, max_output_len):
    def ln(x, g, b):
        m = x.mean(-1, keepdims=True)
        v = ((x - m) ** 2).mean(-1, keepdims=True)
        return (x - m) / jnp.sqrt(v + LN_EPS) * g + b

    B, T = text.shape
    emb = ln(jnp.take(params["embed"], text, axis=0),
             params["embed_gamma"], params["embed_beta"])
    mask = (jnp.arange(T)[None, :] < lengths[:, None]).astype(emb.dtype)[:, :, None]
    out = emb * mask
    for layer in params["conv_layers"]:
        K = layer["w"].shape[0]
        pad_l = (K - 1) // 2
        xp = jnp.pad(out, ((0, 0), (pad_l, (K - 1) - pad_l), (0, 0)))
        conv = sum(jnp.einsum("btc,cd->btd", xp[:, k:k + T], layer["w"][k])
                   for k in range(K)) + layer["b"]
        out = jnp.maximum(ln(conv, layer["gamma"], layer["beta"]), 0.0) * mask
    return jnp.transpose(out[:, :max_output_len, :], (0, 2, 1))


# ---------------------------------------------------------------------------
# Deterministic parameter init (xavier_uniform weights, zero bias)
# ---------------------------------------------------------------------------
def xavier_uniform(key, shape, fan_in, fan_out):
    limit = jnp.sqrt(6.0 / (fan_in + fan_out))
    return jax.random.uniform(key, shape, jnp.float32, -limit, limit)


def make_params(key, vocab, embed_size, n_layers, ksize):
    keys = jax.random.split(key, 1 + n_layers)
    params = {
        "embed": xavier_uniform(keys[0], (vocab, embed_size), vocab, embed_size),
        "embed_gamma": jnp.ones((1, embed_size), jnp.float32),
        "embed_beta": jnp.zeros((1, embed_size), jnp.float32),
        "conv_layers": [],
    }
    cin = embed_size
    for i in range(n_layers):
        cout = embed_size
        w = xavier_uniform(keys[1 + i], (ksize, cin, cout), cin * ksize, cout * ksize)
        params["conv_layers"].append({
            "w": w,
            "b": jnp.zeros((1, cout), jnp.float32),
            "gamma": jnp.ones((1, cout), jnp.float32),
            "beta": jnp.zeros((1, cout), jnp.float32),
        })
        cin = cout
    return params


if __name__ == "__main__":
    key = jax.random.PRNGKey(0)
    k_param, k_text = jax.random.split(key)

    vocab, embed_size = 50, 32
    B, T = 2, 16
    n_conv_layers, ksize = 2, 3

    params = make_params(k_param, vocab, embed_size, n_conv_layers, ksize)
    text = jax.random.randint(k_text, (B, T), 0, vocab, dtype=jnp.int32)
    length_list = [14, 9]
    lengths = jnp.array(length_list, dtype=jnp.int32)
    # match_output_len=True -> narrow to max length; kept static/host-side so
    # forward() stays jittable (no in-graph device_get).
    max_output_len = max(length_list)

    fwd = jax.jit(forward, static_argnames=("max_output_len", "compute_dtype",
                                            "out_dtype", "block_b"))

    # bf16 fast path (bf16 MXU operands + bf16 output writeback; LN stats f32).
    out_bf16, out_len, _ = fwd(text, lengths, params,
                               max_output_len=max_output_len,
                               compute_dtype=jnp.bfloat16,
                               out_dtype=jnp.bfloat16)
    out_bf16 = jax.block_until_ready(out_bf16)

    # f32 path: semantic gate for the fused kernel.
    out_f32, _, _ = fwd(text, lengths, params,
                        max_output_len=max_output_len,
                        compute_dtype=jnp.float32,
                        out_dtype=jnp.float32)
    out_f32 = jax.block_until_ready(out_f32)

    ref = jax.block_until_ready(ref_forward(text, lengths, params, max_output_len))

    assert out_f32.shape == ref.shape == out_bf16.shape, (out_f32.shape, ref.shape)
    assert jnp.allclose(out_f32, ref, atol=1e-4, rtol=1e-4), "f32 kernel mismatch"
    assert jnp.allclose(out_bf16.astype(jnp.float32), ref,
                        atol=5e-2, rtol=5e-2), "bf16 kernel mismatch"
    print("KERNEL_OK")
</pallas_src>

<mosaic_0001>
module attributes {stable_mosaic.version = 11 : i64} {
  func.func @_fused_encoder_kernel(%arg0: i32, %arg1: memref<2xi32, #tpu.memory_space<smem>>, %arg2: memref<32x1xi32, #tpu.memory_space<vmem>>, %arg3: memref<128x32xbf16, #tpu.memory_space<vmem>>, %arg4: memref<1x32xf32, #tpu.memory_space<vmem>>, %arg5: memref<1x32xf32, #tpu.memory_space<vmem>>, %arg6: memref<2x3x32x32xbf16, #tpu.memory_space<vmem>>, %arg7: memref<2x32xf32, #tpu.memory_space<vmem>>, %arg8: memref<2x32xf32, #tpu.memory_space<vmem>>, %arg9: memref<2x32xf32, #tpu.memory_space<vmem>>, %arg10: memref<2x32x16xbf16, #tpu.memory_space<vmem>>) attributes {dimension_semantics = [#tpu.dimension_semantics<parallel>], iteration_bounds = array<i64: 1>, scalar_prefetch = 1 : i64, scratch_operands = 0 : i64, tpu.core_type = #tpu.core_type<tc>, window_params = [{transform_indices = @transform_0, window_bounds = array<i64: 32, 1>}, {pipeline_mode = #tpu.pipeline_mode<synchronous>, transform_indices = @transform_1, window_bounds = array<i64: 128, 32>}, {pipeline_mode = #tpu.pipeline_mode<synchronous>, transform_indices = @transform_2, window_bounds = array<i64: 1, 32>}, {pipeline_mode = #tpu.pipeline_mode<synchronous>, transform_indices = @transform_3, window_bounds = array<i64: 1, 32>}, {pipeline_mode = #tpu.pipeline_mode<synchronous>, transform_indices = @transform_4, window_bounds = array<i64: 2, 3, 32, 32>}, {pipeline_mode = #tpu.pipeline_mode<synchronous>, transform_indices = @transform_5, window_bounds = array<i64: 2, 32>}, {pipeline_mode = #tpu.pipeline_mode<synchronous>, transform_indices = @transform_6, window_bounds = array<i64: 2, 32>}, {pipeline_mode = #tpu.pipeline_mode<synchronous>, transform_indices = @transform_7, window_bounds = array<i64: 2, 32>}, {transform_indices = @transform_8, window_bounds = array<i64: 2, 32, 16>}]} {
    %c0 = arith.constant 0 : index
    %c0_0 = arith.constant 0 : index
    %0 = vector.load %arg2[%c0, %c0_0] : memref<32x1xi32, #tpu.memory_space<vmem>>, vector<32x1xi32>
    %1 = tpu.iota {dimensions = array<i32: 1>} : vector<32x128xi32>
    %2 = vector.broadcast %0 : vector<32x1xi32> to vector<32x128xi32>
    %3 = arith.cmpi eq, %1, %2 : vector<32x128xi32>
    %4 = arith.extui %3 : vector<32x128xi1> to vector<32x128xi32>
    %5 = arith.sitofp %4 : vector<32x128xi32> to vector<32x128xf32>
    %6 = arith.truncf %5 : vector<32x128xf32> to vector<32x128xbf16>
    %c0_1 = arith.constant 0 : index
    %c0_2 = arith.constant 0 : index
    %7 = vector.load %arg3[%c0_1, %c0_2] : memref<128x32xbf16, #tpu.memory_space<vmem>>, vector<128x32xbf16>
    %cst = arith.constant dense<0.000000e+00> : vector<32x32xf32>
    %8 = tpu.matmul %6, %7, %cst {dimension_numbers = #tpu.dot_dimension_numbers<[1], [0], [0], [1], [0, 0, 1, 1], [], []>} : vector<32x128xbf16>, vector<128x32xbf16>, vector<32x32xf32> -> vector<32x32xf32>
    %c0_3 = arith.constant 0 : index
    %c0_4 = arith.constant 0 : index
    %9 = vector.load %arg4[%c0_3, %c0_4] : memref<1x32xf32, #tpu.memory_space<vmem>>, vector<1x32xf32>
    %c0_5 = arith.constant 0 : index
    %c0_6 = arith.constant 0 : index
    %10 = vector.load %arg5[%c0_5, %c0_6] : memref<1x32xf32, #tpu.memory_space<vmem>>, vector<1x32xf32>
    %cst_7 = arith.constant dense<0.000000e+00> : vector<32xf32>
    %11 = vector.multi_reduction <add>, %8, %cst_7 [1] : vector<32x32xf32> to vector<32xf32>
    %12 = vector.shape_cast %11 : vector<32xf32> to vector<32x1xf32>
    %cst_8 = arith.constant 3.125000e-02 : f32
    %13 = vector.broadcast %cst_8 : f32 to vector<32x1xf32>
    %14 = arith.mulf %12, %13 : vector<32x1xf32>
    %15 = vector.broadcast %14 : vector<32x1xf32> to vector<32x32xf32>
    %16 = arith.subf %8, %15 : vector<32x32xf32>
    %17 = arith.mulf %16, %16 : vector<32x32xf32>
    %cst_9 = arith.constant dense<0.000000e+00> : vector<32xf32>
    %18 = vector.multi_reduction <add>, %17, %cst_9 [1] : vector<32x32xf32> to vector<32xf32>
    %19 = vector.shape_cast %18 : vector<32xf32> to vector<32x1xf32>
    %cst_10 = arith.constant 3.125000e-02 : f32
    %20 = vector.broadcast %cst_10 : f32 to vector<32x1xf32>
    %21 = arith.mulf %19, %20 : vector<32x1xf32>
    %cst_11 = arith.constant 9.99999974E-6 : f32
    %22 = vector.broadcast %cst_11 : f32 to vector<32x1xf32>
    %23 = arith.addf %21, %22 : vector<32x1xf32>
    %24 = math.rsqrt %23 : vector<32x1xf32>
    %25 = vector.broadcast %24 : vector<32x1xf32> to vector<32x32xf32>
    %26 = arith.mulf %16, %25 : vector<32x32xf32>
    %27 = vector.broadcast %9 : vector<1x32xf32> to vector<32x32xf32>
    %28 = arith.mulf %26, %27 : vector<32x32xf32>
    %29 = vector.broadcast %10 : vector<1x32xf32> to vector<32x32xf32>
    %30 = arith.addf %28, %29 : vector<32x32xf32>
    %31 = tpu.iota {dimensions = array<i32: 0>} : vector<32x1xi32>
    %cst_12 = arith.constant 0.000000e+00 : f32
    %32 = vector.broadcast %cst_12 : f32 to vector<32x1xf32>
    %c2_i32 = arith.constant 2 : i32
    %33 = arith.muli %arg0, %c2_i32 : i32
    %c0_i32 = arith.constant 0 : i32
    %34 = arith.addi %33, %c0_i32 : i32
    %35 = arith.index_cast %34 : i32 to index
    %36 = memref.load %arg1[%35] : memref<2xi32, #tpu.memory_space<smem>>
    %c0_i32_13 = arith.constant 0 : i32
    %37 = vector.broadcast %c0_i32_13 : i32 to vector<32x1xi32>
    %38 = arith.cmpi sge, %31, %37 : vector<32x1xi32>
    %c0_i32_14 = arith.constant 0 : i32
    %39 = arith.addi %c0_i32_14, %36 : i32
    %40 = vector.broadcast %39 : i32 to vector<32x1xi32>
    %41 = arith.cmpi slt, %31, %40 : vector<32x1xi32>
    %42 = arith.andi %38, %41 : vector<32x1xi1>
    %cst_15 = arith.constant 1.000000e+00 : f32
    %43 = vector.broadcast %cst_15 : f32 to vector<32x1xf32>
    %44 = arith.select %42, %43, %32 : vector<32x1xi1>, vector<32x1xf32>
    %c2_i32_16 = arith.constant 2 : i32
    %45 = arith.muli %arg0, %c2_i32_16 : i32
    %c1_i32 = arith.constant 1 : i32
    %46 = arith.addi %45, %c1_i32 : i32
    %47 = arith.index_cast %46 : i32 to index
    %48 = memref.load %arg1[%47] : memref<2xi32, #tpu.memory_space<smem>>
    %c16_i32 = arith.constant 16 : i32
    %49 = vector.broadcast %c16_i32 : i32 to vector<32x1xi32>
    %50 = arith.cmpi sge, %31, %49 : vector<32x1xi32>
    %c16_i32_17 = arith.constant 16 : i32
    %51 = arith.addi %c16_i32_17, %48 : i32
    %52 = vector.broadcast %51 : i32 to vector<32x1xi32>
    %53 = arith.cmpi slt, %31, %52 : vector<32x1xi32>
    %54 = arith.andi %50, %53 : vector<32x1xi1>
    %cst_18 = arith.constant 1.000000e+00 : f32
    %55 = vector.broadcast %cst_18 : f32 to vector<32x1xf32>
    %56 = arith.select %54, %55, %44 : vector<32x1xi1>, vector<32x1xf32>
    %57 = vector.broadcast %56 : vector<32x1xf32> to vector<32x32xf32>
    %58 = arith.mulf %30, %57 : vector<32x32xf32>
    %cst_19 = arith.constant 1.000000e+00 : f32
    %59 = vector.broadcast %cst_19 : f32 to vector<32x1xf32>
    %c0_i32_20 = arith.constant 0 : i32
    %60 = vector.broadcast %c0_i32_20 : i32 to vector<32x1xi32>
    %61 = arith.cmpi sge, %31, %60 : vector<32x1xi32>
    %c1_i32_21 = arith.constant 1 : i32
    %62 = vector.broadcast %c1_i32_21 : i32 to vector<32x1xi32>
    %63 = arith.cmpi slt, %31, %62 : vector<32x1xi32>
    %64 = arith.andi %61, %63 : vector<32x1xi1>
    %cst_22 = arith.constant 0.000000e+00 : f32
    %65 = vector.broadcast %cst_22 : f32 to vector<32x1xf32>
    %66 = arith.select %64, %65, %59 : vector<32x1xi1>, vector<32x1xf32>
    %c16_i32_23 = arith.constant 16 : i32
    %67 = vector.broadcast %c16_i32_23 : i32 to vector<32x1xi32>
    %68 = arith.cmpi sge, %31, %67 : vector<32x1xi32>
    %c17_i32 = arith.constant 17 : i32
    %69 = vector.broadcast %c17_i32 : i32 to vector<32x1xi32>
    %70 = arith.cmpi slt, %31, %69 : vector<32x1xi32>
    %71 = arith.andi %68, %70 : vector<32x1xi1>
    %cst_24 = arith.constant 0.000000e+00 : f32
    %72 = vector.broadcast %cst_24 : f32 to vector<32x1xf32>
    %73 = arith.select %71, %72, %66 : vector<32x1xi1>, vector<32x1xf32>
    %cst_25 = arith.constant 1.000000e+00 : f32
    %74 = vector.broadcast %cst_25 : f32 to vector<32x1xf32>
    %c15_i32 = arith.constant 15 : i32
    %75 = vector.broadcast %c15_i32 : i32 to vector<32x1xi32>
    %76 = arith.cmpi sge, %31, %75 : vector<32x1xi32>
    %c16_i32_26 = arith.constant 16 : i32
    %77 = vector.broadcast %c16_i32_26 : i32 to vector<32x1xi32>
    %78 = arith.cmpi slt, %31, %77 : vector<32x1xi32>
    %79 = arith.andi %76, %78 : vector<32x1xi1>
    %cst_27 = arith.constant 0.000000e+00 : f32
    %80 = vector.broadcast %cst_27 : f32 to vector<32x1xf32>
    %81 = arith.select %79, %80, %74 : vector<32x1xi1>, vector<32x1xf32>
    %c31_i32 = arith.constant 31 : i32
    %82 = vector.broadcast %c31_i32 : i32 to vector<32x1xi32>
    %83 = arith.cmpi sge, %31, %82 : vector<32x1xi32>
    %c32_i32 = arith.constant 32 : i32
    %84 = vector.broadcast %c32_i32 : i32 to vector<32x1xi32>
    %85 = arith.cmpi slt, %31, %84 : vector<32x1xi32>
    %86 = arith.andi %83, %85 : vector<32x1xi1>
    %cst_28 = arith.constant 0.000000e+00 : f32
    %87 = vector.broadcast %cst_28 : f32 to vector<32x1xf32>
    %88 = arith.select %86, %87, %81 : vector<32x1xi1>, vector<32x1xf32>
    %c0_29 = arith.constant 0 : index
    %c0_30 = arith.constant 0 : index
    %89 = vector.load %arg7[%c0_29, %c0_30] : memref<2x32xf32, #tpu.memory_space<vmem>>, vector<2x32xf32>
    %c0_31 = arith.constant 0 : index
    %c0_32 = arith.constant 0 : index
    %90 = vector.load %arg8[%c0_31, %c0_32] : memref<2x32xf32, #tpu.memory_space<vmem>>, vector<2x32xf32>
    %c0_33 = arith.constant 0 : index
    %c0_34 = arith.constant 0 : index
    %91 = vector.load %arg9[%c0_33, %c0_34] : memref<2x32xf32, #tpu.memory_space<vmem>>, vector<2x32xf32>
    %c1_i32_35 = arith.constant 1 : i32
    %92 = tpu.dynamic_rotate %58 by %c1_i32_35 dim 0 : vector<32x32xf32>, i32 -> vector<32x32xf32>
    %93 = vector.broadcast %73 : vector<32x1xf32> to vector<32x32xf32>
    %94 = arith.mulf %92, %93 : vector<32x32xf32>
    %95 = arith.truncf %94 : vector<32x32xf32> to vector<32x32xbf16>
    %c0_36 = arith.constant 0 : index
    %c0_37 = arith.constant 0 : index
    %c0_38 = arith.constant 0 : index
    %c0_39 = arith.constant 0 : index
    %96 = vector.load %arg6[%c0_36, %c0_37, %c0_38, %c0_39] : memref<2x3x32x32xbf16, #tpu.memory_space<vmem>>, vector<1x1x32x32xbf16>
    %97 = vector.shape_cast %96 : vector<1x1x32x32xbf16> to vector<32x32xbf16>
    %cst_40 = arith.constant dense<0.000000e+00> : vector<32x32xf32>
    %98 = tpu.matmul %95, %97, %cst_40 {dimension_numbers = #tpu.dot_dimension_numbers<[1], [0], [0], [1], [0, 0, 1, 1], [], []>} : vector<32x32xbf16>, vector<32x32xbf16>, vector<32x32xf32> -> vector<32x32xf32>
    %99 = arith.truncf %58 : vector<32x32xf32> to vector<32x32xbf16>
    %c0_41 = arith.constant 0 : index
    %c1 = arith.constant 1 : index
    %c0_42 = arith.constant 0 : index
    %c0_43 = arith.constant 0 : index
    %100 = vector.load %arg6[%c0_41, %c1, %c0_42, %c0_43] : memref<2x3x32x32xbf16, #tpu.memory_space<vmem>>, vector<1x1x32x32xbf16>
    %101 = vector.shape_cast %100 : vector<1x1x32x32xbf16> to vector<32x32xbf16>
    %cst_44 = arith.constant dense<0.000000e+00> : vector<32x32xf32>
    %102 = tpu.matmul %99, %101, %cst_44 {dimension_numbers = #tpu.dot_dimension_numbers<[1], [0], [0], [1], [0, 0, 1, 1], [], []>} : vector<32x32xbf16>, vector<32x32xbf16>, vector<32x32xf32> -> vector<32x32xf32>
    %103 = arith.addf %98, %102 : vector<32x32xf32>
    %c31_i32_45 = arith.constant 31 : i32
    %104 = tpu.dynamic_rotate %58 by %c31_i32_45 dim 0 : vector<32x32xf32>, i32 -> vector<32x32xf32>
    %105 = vector.broadcast %88 : vector<32x1xf32> to vector<32x32xf32>
    %106 = arith.mulf %104, %105 : vector<32x32xf32>
    %107 = arith.truncf %106 : vector<32x32xf32> to vector<32x32xbf16>
    %c0_46 = arith.constant 0 : index
    %c2 = arith.constant 2 : index
    %c0_47 = arith.constant 0 : index
    %c0_48 = arith.constant 0 : index
    %108 = vector.load %arg6[%c0_46, %c2, %c0_47, %c0_48] : memref<2x3x32x32xbf16, #tpu.memory_space<vmem>>, vector<1x1x32x32xbf16>
    %109 = vector.shape_cast %108 : vector<1x1x32x32xbf16> to vector<32x32xbf16>
    %cst_49 = arith.constant dense<0.000000e+00> : vector<32x32xf32>
    %110 = tpu.matmul %107, %109, %cst_49 {dimension_numbers = #tpu.dot_dimension_numbers<[1], [0], [0], [1], [0, 0, 1, 1], [], []>} : vector<32x32xbf16>, vector<32x32xbf16>, vector<32x32xf32> -> vector<32x32xf32>
    %111 = arith.addf %103, %110 : vector<32x32xf32>
    %112 = vector.extract_strided_slice %89 {offsets = [0, 0], sizes = [1, 32], strides = [1, 1]} : vector<2x32xf32> to vector<1x32xf32>
    %113 = vector.broadcast %112 : vector<1x32xf32> to vector<32x32xf32>
    %114 = arith.addf %111, %113 : vector<32x32xf32>
    %115 = vector.extract_strided_slice %90 {offsets = [0, 0], sizes = [1, 32], strides = [1, 1]} : vector<2x32xf32> to vector<1x32xf32>
    %116 = vector.extract_strided_slice %91 {offsets = [0, 0], sizes = [1, 32], strides = [1, 1]} : vector<2x32xf32> to vector<1x32xf32>
    %cst_50 = arith.constant dense<0.000000e+00> : vector<32xf32>
    %117 = vector.multi_reduction <add>, %114, %cst_50 [1] : vector<32x32xf32> to vector<32xf32>
    %118 = vector.shape_cast %117 : vector<32xf32> to vector<32x1xf32>
    %cst_51 = arith.constant 3.125000e-02 : f32
    %119 = vector.broadcast %cst_51 : f32 to vector<32x1xf32>
    %120 = arith.mulf %118, %119 : vector<32x1xf32>
    %121 = vector.broadcast %120 : vector<32x1xf32> to vector<32x32xf32>
    %122 = arith.subf %114, %121 : vector<32x32xf32>
    %123 = arith.mulf %122, %122 : vector<32x32xf32>
    %cst_52 = arith.constant dense<0.000000e+00> : vector<32xf32>
    %124 = vector.multi_reduction <add>, %123, %cst_52 [1] : vector<32x32xf32> to vector<32xf32>
    %125 = vector.shape_cast %124 : vector<32xf32> to vector<32x1xf32>
    %cst_53 = arith.constant 3.125000e-02 : f32
    %126 = vector.broadcast %cst_53 : f32 to vector<32x1xf32>
    %127 = arith.mulf %125, %126 : vector<32x1xf32>
    %cst_54 = arith.constant 9.99999974E-6 : f32
    %128 = vector.broadcast %cst_54 : f32 to vector<32x1xf32>
    %129 = arith.addf %127, %128 : vector<32x1xf32>
    %130 = math.rsqrt %129 : vector<32x1xf32>
    %131 = vector.broadcast %130 : vector<32x1xf32> to vector<32x32xf32>
    %132 = arith.mulf %122, %131 : vector<32x32xf32>
    %133 = vector.broadcast %115 : vector<1x32xf32> to vector<32x32xf32>
    %134 = arith.mulf %132, %133 : vector<32x32xf32>
    %135 = vector.broadcast %116 : vector<1x32xf32> to vector<32x32xf32>
    %136 = arith.addf %134, %135 : vector<32x32xf32>
    %cst_55 = arith.constant 0.000000e+00 : f32
    %137 = vector.broadcast %cst_55 : f32 to vector<32x32xf32>
    %138 = arith.maximumf %136, %137 : vector<32x32xf32>
    %139 = vector.broadcast %56 : vector<32x1xf32> to vector<32x32xf32>
    %140 = arith.mulf %138, %139 : vector<32x32xf32>
    %c1_i32_56 = arith.constant 1 : i32
    %141 = tpu.dynamic_rotate %140 by %c1_i32_56 dim 0 : vector<32x32xf32>, i32 -> vector<32x32xf32>
    %142 = vector.broadcast %73 : vector<32x1xf32> to vector<32x32xf32>
    %143 = arith.mulf %141, %142 : vector<32x32xf32>
    %144 = arith.truncf %143 : vector<32x32xf32> to vector<32x32xbf16>
    %c1_57 = arith.constant 1 : index
    %c0_58 = arith.constant 0 : index
    %c0_59 = arith.constant 0 : index
    %c0_60 = arith.constant 0 : index
    %145 = vector.load %arg6[%c1_57, %c0_58, %c0_59, %c0_60] : memref<2x3x32x32xbf16, #tpu.memory_space<vmem>>, vector<1x1x32x32xbf16>
    %146 = vector.shape_cast %145 : vector<1x1x32x32xbf16> to vector<32x32xbf16>
    %cst_61 = arith.constant dense<0.000000e+00> : vector<32x32xf32>
    %147 = tpu.matmul %144, %146, %cst_61 {dimension_numbers = #tpu.dot_dimension_numbers<[1], [0], [0], [1], [0, 0, 1, 1], [], []>} : vector<32x32xbf16>, vector<32x32xbf16>, vector<32x32xf32> -> vector<32x32xf32>
    %148 = arith.truncf %140 : vector<32x32xf32> to vector<32x32xbf16>
    %c1_62 = arith.constant 1 : index
    %c1_63 = arith.constant 1 : index
    %c0_64 = arith.constant 0 : index
    %c0_65 = arith.constant 0 : index
    %149 = vector.load %arg6[%c1_62, %c1_63, %c0_64, %c0_65] : memref<2x3x32x32xbf16, #tpu.memory_space<vmem>>, vector<1x1x32x32xbf16>
    %150 = vector.shape_cast %149 : vector<1x1x32x32xbf16> to vector<32x32xbf16>
    %cst_66 = arith.constant dense<0.000000e+00> : vector<32x32xf32>
    %151 = tpu.matmul %148, %150, %cst_66 {dimension_numbers = #tpu.dot_dimension_numbers<[1], [0], [0], [1], [0, 0, 1, 1], [], []>} : vector<32x32xbf16>, vector<32x32xbf16>, vector<32x32xf32> -> vector<32x32xf32>
    %152 = arith.addf %147, %151 : vector<32x32xf32>
    %c31_i32_67 = arith.constant 31 : i32
    %153 = tpu.dynamic_rotate %140 by %c31_i32_67 dim 0 : vector<32x32xf32>, i32 -> vector<32x32xf32>
    %154 = vector.broadcast %88 : vector<32x1xf32> to vector<32x32xf32>
    %155 = arith.mulf %153, %154 : vector<32x32xf32>
    %156 = arith.truncf %155 : vector<32x32xf32> to vector<32x32xbf16>
    %c1_68 = arith.constant 1 : index
    %c2_69 = arith.constant 2 : index
    %c0_70 = arith.constant 0 : index
    %c0_71 = arith.constant 0 : index
    %157 = vector.load %arg6[%c1_68, %c2_69, %c0_70, %c0_71] : memref<2x3x32x32xbf16, #tpu.memory_space<vmem>>, vector<1x1x32x32xbf16>
    %158 = vector.shape_cast %157 : vector<1x1x32x32xbf16> to vector<32x32xbf16>
    %cst_72 = arith.constant dense<0.000000e+00> : vector<32x32xf32>
    %159 = tpu.matmul %156, %158, %cst_72 {dimension_numbers = #tpu.dot_dimension_numbers<[1], [0], [0], [1], [0, 0, 1, 1], [], []>} : vector<32x32xbf16>, vector<32x32xbf16>, vector<32x32xf32> -> vector<32x32xf32>
    %160 = arith.addf %152, %159 : vector<32x32xf32>
    %161 = vector.extract_strided_slice %89 {offsets = [1, 0], sizes = [1, 32], strides = [1, 1]} : vector<2x32xf32> to vector<1x32xf32>
    %162 = vector.broadcast %161 : vector<1x32xf32> to vector<32x32xf32>
    %163 = arith.addf %160, %162 : vector<32x32xf32>
    %164 = vector.extract_strided_slice %90 {offsets = [1, 0], sizes = [1, 32], strides = [1, 1]} : vector<2x32xf32> to vector<1x32xf32>
    %165 = vector.extract_strided_slice %91 {offsets = [1, 0], sizes = [1, 32], strides = [1, 1]} : vector<2x32xf32> to vector<1x32xf32>
    %cst_73 = arith.constant dense<0.000000e+00> : vector<32xf32>
    %166 = vector.multi_reduction <add>, %163, %cst_73 [1] : vector<32x32xf32> to vector<32xf32>
    %167 = vector.shape_cast %166 : vector<32xf32> to vector<32x1xf32>
    %cst_74 = arith.constant 3.125000e-02 : f32
    %168 = vector.broadcast %cst_74 : f32 to vector<32x1xf32>
    %169 = arith.mulf %167, %168 : vector<32x1xf32>
    %170 = vector.broadcast %169 : vector<32x1xf32> to vector<32x32xf32>
    %171 = arith.subf %163, %170 : vector<32x32xf32>
    %172 = arith.mulf %171, %171 : vector<32x32xf32>
    %cst_75 = arith.constant dense<0.000000e+00> : vector<32xf32>
    %173 = vector.multi_reduction <add>, %172, %cst_75 [1] : vector<32x32xf32> to vector<32xf32>
    %174 = vector.shape_cast %173 : vector<32xf32> to vector<32x1xf32>
    %cst_76 = arith.constant 3.125000e-02 : f32
    %175 = vector.broadcast %cst_76 : f32 to vector<32x1xf32>
    %176 = arith.mulf %174, %175 : vector<32x1xf32>
    %cst_77 = arith.constant 9.99999974E-6 : f32
    %177 = vector.broadcast %cst_77 : f32 to vector<32x1xf32>
    %178 = arith.addf %176, %177 : vector<32x1xf32>
    %179 = math.rsqrt %178 : vector<32x1xf32>
    %180 = vector.broadcast %179 : vector<32x1xf32> to vector<32x32xf32>
    %181 = arith.mulf %171, %180 : vector<32x32xf32>
    %182 = vector.broadcast %164 : vector<1x32xf32> to vector<32x32xf32>
    %183 = arith.mulf %181, %182 : vector<32x32xf32>
    %184 = vector.broadcast %165 : vector<1x32xf32> to vector<32x32xf32>
    %185 = arith.addf %183, %184 : vector<32x32xf32>
    %cst_78 = arith.constant 0.000000e+00 : f32
    %186 = vector.broadcast %cst_78 : f32 to vector<32x32xf32>
    %187 = arith.maximumf %185, %186 : vector<32x32xf32>
    %188 = vector.broadcast %56 : vector<32x1xf32> to vector<32x32xf32>
    %189 = arith.mulf %187, %188 : vector<32x32xf32>
    %190 = vector.extract_strided_slice %189 {offsets = [0, 0], sizes = [16, 32], strides = [1, 1]} : vector<32x32xf32> to vector<16x32xf32>
    %191 = tpu.transpose %190, [1, 0] : vector<16x32xf32> -> vector<32x16xf32>
    %192 = arith.truncf %191 : vector<32x16xf32> to vector<32x16xbf16>
    %c0_79 = arith.constant 0 : index
    %c0_80 = arith.constant 0 : index
    %c0_81 = arith.constant 0 : index
    %193 = vector.load %arg10[%c0_79, %c0_80, %c0_81] : memref<2x32x16xbf16, #tpu.memory_space<vmem>>, vector<1x32x16xbf16>
    %194 = vector.shape_cast %193 : vector<1x32x16xbf16> to vector<32x16xbf16>
    %195 = vector.shape_cast %192 : vector<32x16xbf16> to vector<1x32x16xbf16>
    tpu.vector_store %arg10[%c0_79, %c0_80, %c0_81], %195 {strides = array<i32>} : memref<2x32x16xbf16, #tpu.memory_space<vmem>>, vector<1x32x16xbf16>,
    %196 = vector.extract_strided_slice %189 {offsets = [16, 0], sizes = [16, 32], strides = [1, 1]} : vector<32x32xf32> to vector<16x32xf32>
    %197 = tpu.transpose %196, [1, 0] : vector<16x32xf32> -> vector<32x16xf32>
    %198 = arith.truncf %197 : vector<32x16xf32> to vector<32x16xbf16>
    %c1_82 = arith.constant 1 : index
    %c0_83 = arith.constant 0 : index
    %c0_84 = arith.constant 0 : index
    %199 = vector.load %arg10[%c1_82, %c0_83, %c0_84] : memref<2x32x16xbf16, #tpu.memory_space<vmem>>, vector<1x32x16xbf16>
    %200 = vector.shape_cast %199 : vector<1x32x16xbf16> to vector<32x16xbf16>
    %201 = vector.shape_cast %198 : vector<32x16xbf16> to vector<1x32x16xbf16>
    tpu.vector_store %arg10[%c1_82, %c0_83, %c0_84], %201 {strides = array<i32>} : memref<2x32x16xbf16, #tpu.memory_space<vmem>>, vector<1x32x16xbf16>,
    return
  }
  func.func @transform_0(%arg0: i32, %arg1: memref<2xi32, #tpu.memory_space<smem>>) -> (i32, i32) {
    %c0_i32 = arith.constant 0 : i32
    %c0_i32_0 = arith.constant 0 : i32
    return %arg0, %c0_i32 : i32, i32
  }
  func.func @transform_1(%arg0: i32, %arg1: memref<2xi32, #tpu.memory_space<smem>>) -> (i32, i32) {
    %c0_i32 = arith.constant 0 : i32
    %c0_i32_0 = arith.constant 0 : i32
    %c0_i32_1 = arith.constant 0 : i32
    return %c0_i32, %c0_i32_0 : i32, i32
  }
  func.func @transform_2(%arg0: i32, %arg1: memref<2xi32, #tpu.memory_space<smem>>) -> (i32, i32) {
    %c0_i32 = arith.constant 0 : i32
    %c0_i32_0 = arith.constant 0 : i32
    %c0_i32_1 = arith.constant 0 : i32
    return %c0_i32, %c0_i32_0 : i32, i32
  }
  func.func @transform_3(%arg0: i32, %arg1: memref<2xi32, #tpu.memory_space<smem>>) -> (i32, i32) {
    %c0_i32 = arith.constant 0 : i32
    %c0_i32_0 = arith.constant 0 : i32
    %c0_i32_1 = arith.constant 0 : i32
    return %c0_i32, %c0_i32_0 : i32, i32
  }
  func.func @transform_4(%arg0: i32, %arg1: memref<2xi32, #tpu.memory_space<smem>>) -> (i32, i32, i32, i32) {
    %c0_i32 = arith.constant 0 : i32
    %c0_i32_0 = arith.constant 0 : i32
    %c0_i32_1 = arith.constant 0 : i32
    %c0_i32_2 = arith.constant 0 : i32
    %c0_i32_3 = arith.constant 0 : i32
    return %c0_i32, %c0_i32_0, %c0_i32_1, %c0_i32_2 : i32, i32, i32, i32
  }
  func.func @transform_5(%arg0: i32, %arg1: memref<2xi32, #tpu.memory_space<smem>>) -> (i32, i32) {
    %c0_i32 = arith.constant 0 : i32
    %c0_i32_0 = arith.constant 0 : i32
    %c0_i32_1 = arith.constant 0 : i32
    return %c0_i32, %c0_i32_0 : i32, i32
  }
  func.func @transform_6(%arg0: i32, %arg1: memref<2xi32, #tpu.memory_space<smem>>) -> (i32, i32) {
    %c0_i32 = arith.constant 0 : i32
    %c0_i32_0 = arith.constant 0 : i32
    %c0_i32_1 = arith.constant 0 : i32
    return %c0_i32, %c0_i32_0 : i32, i32
  }
  func.func @transform_7(%arg0: i32, %arg1: memref<2xi32, #tpu.memory_space<smem>>) -> (i32, i32) {
    %c0_i32 = arith.constant 0 : i32
    %c0_i32_0 = arith.constant 0 : i32
    %c0_i32_1 = arith.constant 0 : i32
    return %c0_i32, %c0_i32_0 : i32, i32
  }
  func.func @transform_8(%arg0: i32, %arg1: memref<2xi32, #tpu.memory_space<smem>>) -> (i32, i32, i32) {
    %c0_i32 = arith.constant 0 : i32
    %c0_i32_0 = arith.constant 0 : i32
    %c0_i32_1 = arith.constant 0 : i32
    return %arg0, %c0_i32, %c0_i32_0 : i32, i32, i32
  }
}

</mosaic_0001>

<bundles_post_ra>
// kernel: forward.1
= control target key start
LH: loop header
LB: loop body
LE: loop exit
PB: predicated region body
PF: predicated region fallthrough
CT: control target
= control target key end

     0   :  { %s1768_s0 = inlined_call_operand.vmem [shape: s32[2], index: 0, kind: input, shape index: {}]   ;;  %s1769_s1 = inlined_call_operand.vmem [shape: s32[32,1], index: 1, kind: input, shape index: {}]   ;;  %s1770_s2 = inlined_call_operand.vmem [shape: bf16[128,32], index: 2, kind: input, shape index: {}]   ;;  %s1771_s3 = inlined_call_operand.vmem [shape: f32[1,32], index: 3, kind: input, shape index: {}]   ;;  %s1772_s4 = inlined_call_operand.vmem [shape: f32[1,32], index: 4, kind: input, shape index: {}]   ;;  %s1773_s5 = inlined_call_operand.vmem [shape: bf16[2,3,32,32], index: 5, kind: input, shape index: {}]   ;;  %s1774_s6 = inlined_call_operand.vmem [shape: f32[2,32], index: 6, kind: input, shape index: {}]   ;;  %s1775_s7 = inlined_call_operand.vmem [shape: f32[2,32], index: 7, kind: input, shape index: {}]   ;;  %s1776_s8 = inlined_call_operand.vmem [shape: f32[2,32], index: 8, kind: input, shape index: {}]   ;;  %s1777_s9 = inlined_call_operand.vmem [shape: bf16[2,32,16], index: 9, kind: output, shape index: {}]  }
   0x1   :  { %s14_s11 = sshll.u32 %s1768_s0, 4  ;;  %s15_s11 = int_to_ptr.vmem [resolvable:$true] %s14_s11 }
   0x2   :  { %s1418_s12 = scalar_lea.vmem %s15_s11, 16  ;;  %p1423_p1 = scmp.lt.s32.totalorder %s15_s11, %s15_s11 }
   0x3   :  { %p1419_p0 = scmp.ne.s32.totalorder %s15_s11, %s1418_s12  ;;  %p1424_p2 = scmp.lt.s32.totalorder %s1418_s12, %s1418_s12 }
   0x5   :  { %p1425_p3 = por %p1424_p2, %p1423_p1 }
   0x7   :  { %p1426_p4 = pnand %p1425_p3, %p1419_p0 }
   0x9   :  { %1429 = shalt.err (!%p1426_p4)  }
   0xa   :  { %s1432_s13 = smov [#allocation3]  }
   0xb   :  { %17 = dma.vmem_to_smem %s15_s11, 16, %s1432_s13, [#allocation2] }
   0xc   :  { %1430 = dma.done.wait [#allocation2], 16 }
   0xd   :  { %1431 = vsyncadd [#allocation2], 4294967280 }
   0xe   :  { %19 = sfence }
   0xf   :  { %v39_v0 = vld [vmem:[%s1769_s1 + $0x10] sm:$0xff]  ;;  %v37_v1 = vld [vmem:[%s1769_s1] sm:$0xff]  ;;  %v1433_v2 = vmov 0   ;;  %v40_v3 = vld [vmem:[%s1769_s1 + $0x18] sm:$0xff]  ;;  %v41_v13 = vlaneseq  ;;  %v1434_v19 = vmov 1.0|1.0  }
  0x10   :  { %1349 = vset.pattern.permute.xlu1 %v1433_v2  ;;  %1348 = vset.pattern.permute.xlu0 %v1433_v2  ;;  %v38_v4 = vld [vmem:[%s1769_s1 + $0x8] sm:$0xff]  ;;  %v1374_v5 = vld [vmem:[%s1770_s2] sm:$0xff]   ;;  %v1376_v7 = vld [vmem:[%s1770_s2 + $0x10] sm:$0xff]   ;;  %vm184_vm6 = vcmask 261120   ;;  %s263_s23 = sld [smem:[#allocation3]]  ;;  %s1160_s24 = sld [smem:[#allocation3 + $0x1]] }
  0x11   :  { %50 = vperm.xlu1 %1349, %v39_v0   ;;  %44 = vperm.xlu0 %1348, %v37_v1   ;;  %v1375_v6 = vld [vmem:[%s1770_s2 + $0x8] sm:$0xff]   ;;  %v1377_v8 = vld [vmem:[%s1770_s2 + $0x18] sm:$0xff]   ;;  %v1378_v9 = vld [vmem:[%s1770_s2 + $0x20] sm:$0xff]   ;;  %v42_v16 = vand.u32 127, %v41_v13  ;;  %v1566_v61 = vshrl.u32 %v41_v13, 7  ;;  %v1435_v13 = vmov 0.0  }
  0x12   :  { %1259 = vmatprep.subr.bf16.mxu0 %v1374_v5  ;;  %v1379_v10 = vld [vmem:[%s1770_s2 + $0x28] sm:$0xff]   ;;  %v1380_v11 = vld [vmem:[%s1770_s2 + $0x30] sm:$0xff]   ;;  %v1381_v12 = vld [vmem:[%s1770_s2 + $0x38] sm:$0xff]  }
  0x13   :  { %1260 = vmatpush3.bf16.msra.mxu0 %v1374_v5  ;;  %v1382_v48 = vld [vmem:[%s1773_s5 + $0x10] sm:$0xff]   ;;  %v1383_v49 = vld [vmem:[%s1773_s5 + $0x18] sm:$0xff]   ;;  %v1384_v50 = vld [vmem:[%s1773_s5] sm:$0xff]   ;;  %v1569_v1 = vadd.s32 24, %v1566_v61  ;;  %vm305_vm12 = vcmp.lt.s32.totalorder %v1566_v61, 1 }
  0x14   :  { %1261 = vmatprep.subr.bf16.mxu0 %v1375_v6  ;;  %1287 = vmatprep.subr.bf16.mxu1 %v1384_v50  ;;  %v1385_v51 = vld [vmem:[%s1773_s5 + $0x8] sm:$0xff]   ;;  %v1562_v52 = vld [vmem:[%s1773_s5 + $0x20] sm:$0xff]  }
  0x15   :  { %53 = vperm.xlu1 %1349, %v40_v3   ;;  %47 = vperm.xlu0 %1348, %v38_v4  }
  0x16   :  { %1288 = vmatpush3.bf16.msra.mxu1 %v1384_v50  ;;  %v268_v3 = vstv %s263_s23  ;;  %s287_s25 = sadd.s32 16, %s1160_s24 }
  0x17   :  { %1262 = vmatpush3.bf16.msra.mxu0 %v1375_v6  ;;  %1289 = vmatprep.subr.bf16.mxu1 %v1385_v51  ;;  %vm272_vm7 = vcmp.lt.s32.totalorder %v1569_v1, %v268_v3  ;;  %v288_v4 = vstv %s287_s25  ;;  %v1158_v6 = vld [vmem:[%s1771_s3] ss:$0 sm:$0xff]  ;;  %vm269_vm8 = vcmp.lt.s32.totalorder %v1566_v61, %v268_v3 }
  0x18   :  { %1263 = vmatprep.subr.bf16.mxu0 %v1376_v7  ;;  %vm292_vm9 = vcmp.lt.s32.totalorder %v1569_v1, %v288_v4 }
  0x1a   :  { %1290 = vmatpush3.bf16.msra.mxu1 %v1385_v51 }
  0x1b   :  { %1264 = vmatpush3.bf16.msra.mxu0 %v1376_v7  ;;  %1295 = vmatprep.subr.bf16.mxu1 %v1562_v52 }
  0x1c   :  { %1265 = vmatprep.subr.bf16.mxu0 %v1377_v8 }
  0x1f   :  { %1266 = vmatpush3.bf16.msra.mxu0 %v1377_v8 }
  0x20   :  { %1267 = vmatprep.subr.bf16.mxu0 %v1378_v9 }
  0x23   :  { %1268 = vmatpush3.bf16.msra.mxu0 %v1378_v9  ;;  %v259_v9 = vadd.s32 8, %v1566_v61 }
  0x24   :  { %1269 = vmatprep.subr.bf16.mxu0 %v1379_v10 }
  0x25   :  { %vm270_vm10 = vcmp.lt.s32.totalorder %v259_v9, %v268_v3  ;;  %vm330_vm15 = vcmp.ge.s32.totalorder %v259_v9, 15 }
  0x27   :  { %1270 = vmatpush3.bf16.msra.mxu0 %v1379_v10 }
  0x28   :  { %1271 = vmatprep.subr.bf16.mxu0 %v1380_v11 }
  0x2b   :  { %1272 = vmatpush3.bf16.msra.mxu0 %v1380_v11  ;;  %v1159_v11 = vld [vmem:[%s1772_s4] ss:$0 sm:$0xff] }
  0x2c   :  { %1273 = vmatprep.subr.bf16.mxu0 %v1381_v12 }
  0x2f   :  { %1274 = vmatpush3.bf16.msra.mxu0 %v1381_v12  ;;  %v260_v12 = vadd.s32 16, %v1566_v61 }
  0x30   :  { %1279 = vmatprep.subr.bf16.mxu0 %v1382_v48 }
  0x31   :  { %vm271_vm11 = vcmp.lt.s32.totalorder %v260_v12, %v268_v3  ;;  %vm291_vm13 = vcmp.lt.s32.totalorder %v260_v12, %v288_v4  ;;  %vm319_vm14 = vcmp.lt.s32.totalorder %v260_v12, 17 }
  0x90   :  { %v51_v14 = vpop.permute.xlu1 %50  ;;  %v45_v15 = vpop.permute.xlu0 %44 }
  0x91   :  { %vm57_vm0 = vcmp.eq.s32.totalorder %v42_v16, %v51_v14  ;;  %vm55_vm3 = vcmp.eq.s32.totalorder %v42_v16, %v45_v15  ;;  %v280_v14 = vsel %vm272_vm7, 1.0, %v1435_v13 }
  0x94   :  { %v54_v17 = vpop.permute.xlu1 %53  ;;  %v48_v18 = vpop.permute.xlu0 %47 }
  0x95   :  { %vm58_vm1 = vcmp.eq.s32.totalorder %v42_v16, %v54_v17  ;;  %vm56_vm2 = vcmp.eq.s32.totalorder %v42_v16, %v48_v18  ;;  %v1583_v18 = vsel %vm269_vm8, 1.0, %v1435_v13 }
  0x96   :  { %vm1156_vm4 = vmpackc.low %vm58_vm1, %vm57_vm0  ;;  %vm527_vm0 = vcmp.lt.s32.totalorder %v1566_v61, 7  ;;  %vm348_vm1 = vcmp.ge.s32.totalorder %v1569_v1, 31  ;;  %v1641_v1 = vsub.s32 0, %v1566_v61 }
  0x97   :  { %vm1154_vm5 = vmpackc.low %vm56_vm2, %vm55_vm3  ;;  %vm1080_vm2 = vcmask 125952  }
  0x98   :  { %1275 = vmatprep.mubr.msk.bf16.mxu0 %vm1154_vm5, %v1434_v19 }
  0x99   :  { %1276 = vmatmul.mubr.msk.bf16.vlgmr.msra.gmra.mrb[0].mxu0 %vm1156_vm4, %v1434_v19 }
  0x9a   :  { %1280 = vmatpush3.bf16.msra.mxu0 %v1382_v48 }
  0x9b   :  { %1281 = vmatprep.subr.bf16.mxu0 %v1383_v49 }
  0x9e   :  { %1282 = vmatpush3.bf16.msra.mxu0 %v1383_v49 }
 0x16c   :  { %v1277_v20 = vpop.f32.mrb[0].mxu0 }
 0x16d   :  { %v167_v21 = vpop.f32.mrb[1].mxu0  ;;  %v191_v27 = vsel %vm184_vm6, %v1277_v20, 0.0 }
 0x16e   :  { %v1278_v22 = vpop.f32.mrb[2].mxu0  ;;  %v185_v23 = vsel %vm184_vm6, %v167_v21, 0.0 }
 0x16f   :  { %186 = vadd.xlane.f32.xlu0 %v185_v23  ;;  %v170_v24 = vpop.f32.mrb[3].mxu0  ;;  %v194_v25 = vsel %vm184_vm6, %v1278_v22, 0.0 }
 0x170   :  { %195 = vadd.xlane.f32.xlu1 %v194_v25  ;;  %v188_v26 = vsel %vm184_vm6, %v170_v24, 0.0 }
 0x173   :  { %189 = vadd.xlane.f32.xlu0 %v188_v26  ;;  %v1590_v26 = vsel %vm270_vm10, 1.0, %v1435_v13 }
 0x177   :  { %192 = vadd.xlane.f32.xlu0 %v191_v27 }
 0x1fc   :  { %v187_v28 = vpop.xlane.xlu0 %186 }
 0x1fd   :  { %v197_v29 = vmul.f32 0.03125, %v187_v28  ;;  %v196_v30 = vpop.xlane.xlu1 %195 }
 0x1fe   :  { %v200_v31 = vmul.f32 0.03125, %v196_v30 }
 0x1ff   :  { %v201_v32 = vsub.f32 %v167_v21, %v197_v29  ;;  %v1586_v21 = vsel %vm292_vm9, 1.0, %v280_v14 }
 0x200   :  { %v1531_v33 = vsub.f32 %v1278_v22, %v200_v31  ;;  %v190_v34 = vpop.xlane.xlu0 %189  ;;  %v279_v31 = vsel %vm271_vm11, 1.0, %v1435_v13 }
 0x201   :  { %v198_v35 = vmul.f32 0.03125, %v190_v34  ;;  %v205_v36 = vmul.f32 %v201_v32, %v201_v32 }
 0x202   :  { %v208_v37 = vmul.f32 %v1531_v33, %v1531_v33 }
 0x203   :  { %v1535_v38 = vsub.f32 %v170_v24, %v198_v35  ;;  %v209_v39 = vsel %vm184_vm6, %v205_v36, 0.0 }
 0x204   :  { %210 = vadd.xlane.f32.xlu1 %v209_v39  ;;  %v193_v40 = vpop.xlane.xlu0 %192  ;;  %v218_v41 = vsel %vm184_vm6, %v208_v37, 0.0 }
 0x205   :  { %v199_v42 = vmul.f32 0.03125, %v193_v40  ;;  %219 = vadd.xlane.f32.xlu0 %v218_v41  ;;  %v206_v43 = vmul.f32 %v1535_v38, %v1535_v38 }
 0x207   :  { %v1541_v44 = vsub.f32 %v1277_v20, %v199_v42  ;;  %v212_v45 = vsel %vm184_vm6, %v206_v43, 0.0 }
 0x208   :  { %213 = vadd.xlane.f32.xlu1 %v212_v45 }
 0x209   :  { %v207_v46 = vmul.f32 %v1541_v44, %v1541_v44 }
 0x20b   :  { %v215_v47 = vsel %vm184_vm6, %v207_v46, 0.0 }
 0x20c   :  { %216 = vadd.xlane.f32.xlu0 %v215_v47 }
 0x291   :  { %v211_v53 = vpop.xlane.xlu1 %210 }
 0x292   :  { %v221_v54 = vmul.f32 0.03125, %v211_v53  ;;  %v220_v55 = vpop.xlane.xlu0 %219 }
 0x293   :  { %v224_v56 = vmul.f32 0.03125, %v220_v55 }
 0x294   :  { %v225_v57 = vadd.f32 1e-05, %v221_v54 }
 0x295   :  { %v228_v58 = vadd.f32 1e-05, %v224_v56  ;;  %v214_v59 = vpop.xlane.xlu1 %213 }
 0x296   :  { %1394 = vrsqrt.f32 %v225_v57  ;;  %v222_v60 = vmul.f32 0.03125, %v214_v59 }
 0x297   :  { %1396 = vrsqrt.f32 %v228_v58 }
 0x298   :  { %v226_v62 = vadd.f32 1e-05, %v222_v60 }
 0x299   :  { %v217_v63 = vpop.xlane.xlu0 %216 }
 0x29a   :  { %1398 = vrsqrt.f32 %v226_v62  ;;  %v223_v0 = vmul.f32 0.03125, %v217_v63  ;;  %v1387_v63 = vld [vmem:[%s1773_s5 + $0x28] sm:$0xff]  }
 0x29c   :  { %v227_v2 = vadd.f32 1e-05, %v223_v0 }
 0x29e   :  { %1400 = vrsqrt.f32 %v227_v2 }
 0x2a0   :  { %v1395_v5 = vpop.eup %1394 }
 0x2a1   :  { %v1397_v7 = vpop.eup %1396  ;;  %v233_v8 = vmul.f32 %v1395_v5, %v201_v32  ;;  %v1436_v32 = vmov 1.0  }
 0x2a2   :  { %v236_v10 = vmul.f32 %v1397_v7, %v1531_v33  ;;  %v1596_v33 = vsel %vm305_vm12, 0.0, %v1436_v32  ;;  %v1608_v46 = vsel %vm319_vm14, 0.0, %v1436_v32  ;;  %v1610_v47 = vsel %vm330_vm15, 0.0, %v1436_v32 }
 0x2a3   :  { %v243_v15 = vmul.f32 %v1158_v6, %v233_v8  ;;  %v1632_v2 = vsel %vm348_vm1, 0.0, %v1436_v32 }
 0x2a4   :  { %v1399_v16 = vpop.eup %1398  ;;  %v246_v17 = vmul.f32 %v1158_v6, %v236_v10  ;;  %v1646_v10 = vld [vmem:[%s1774_s6] sm:$0x3] }
 0x2a5   :  { %v234_v19 = vmul.f32 %v1399_v16, %v1535_v38  ;;  %v253_v20 = vadd.f32 %v1159_v11, %v243_v15  ;;  %v1601_v38 = vsel %vm291_vm13, 1.0, %v279_v31  ;;  %v617_v12 = vrot.slane %v1646_v10, %v1641_v1 }
 0x2a6   :  { %v256_v22 = vadd.f32 %v1159_v11, %v246_v17 }
 0x2a7   :  { %v244_v23 = vmul.f32 %v1158_v6, %v234_v19  ;;  %v301_v24 = vmul.f32 %v1583_v18, %v253_v20 }
 0x2a8   :  { %v1401_v25 = vpop.eup %1400  ;;  %v304_v27 = vmul.f32 %v1586_v21, %v256_v22 }
 0x2a9   :  { %v235_v28 = vmul.f32 %v1401_v25, %v1541_v44  ;;  %v254_v29 = vadd.f32 %v1159_v11, %v244_v23  ;;  %v364_v30 = vrot.slane %v301_v24, 7  ;;  %v523_v54 = vrot.slane %v301_v24, 1 }
 0x2aa   :  { %v367_v34 = vrot.slane %v304_v27, 7  ;;  %v526_v0 = vrot.slane %v304_v27, 1 }
 0x2ab   :  { %v245_v35 = vmul.f32 %v1158_v6, %v235_v28  ;;  %v302_v36 = vmul.f32 %v1590_v26, %v254_v29 }
 0x2ac   :  { %v371_v37 = vsel %vm305_vm12, %v367_v34, %v364_v30  ;;  %v531_v3 = vsel %vm527_vm0, %v526_v0, %v523_v54 }
 0x2ad   :  { %v255_v39 = vadd.f32 %v1159_v11, %v245_v35  ;;  %v382_v40 = vpack.c.bf16 %v302_v36, %v301_v24  ;;  %v365_v41 = vrot.slane %v302_v36, 7  ;;  %v372_v42 = vmul.f32 %v371_v37, %v1596_v33 }
 0x2ae   :  { %v524_v50 = vrot.slane %v302_v36, 1  ;;  %v535_v5 = vmul.f32 %v531_v3, %v1632_v2 }
 0x2af   :  { %1283 = vmatprep.mubr.msk.bf16.mxu0 %vm184_vm6, %v382_v40  ;;  %v370_v43 = vsel %vm305_vm12, %v364_v30, %v365_v41  ;;  %v303_v44 = vmul.f32 %v1601_v38, %v255_v39 }
 0x2b0   :  { %v376_v45 = vpack.c.bf16 %v370_v43, %v372_v42  ;;  %v530_v59 = vsel %vm527_vm0, %v523_v54, %v524_v50 }
 0x2b1   :  { %v383_v48 = vpack.c.bf16 %v304_v27, %v303_v44  ;;  %v366_v49 = vrot.slane %v303_v44, 7  ;;  %v525_v51 = vrot.slane %v303_v44, 1 }
 0x2b2   :  { %1291 = vmatprep.mubr.msk.bf16.mxu1 %vm184_vm6, %v376_v45 }
 0x2b3   :  { %1284 = vmatmul.mubr.msk.bf16.vlgmr.msra.gmra.mrb[4].mxu0 %vm184_vm6, %v383_v48  ;;  %v369_v53 = vsel %vm305_vm12, %v365_v41, %v366_v49  ;;  %v529_v55 = vsel %vm527_vm0, %v524_v50, %v525_v51  ;;  %v368_v58 = vsel %vm305_vm12, %v366_v49, %v367_v34  ;;  %v528_v4 = vsel %vm527_vm0, %v525_v51, %v526_v0 }
 0x2b4   :  { %v374_v56 = vmul.f32 %v369_v53, %v1608_v46  ;;  %v533_v57 = vmul.f32 %v529_v55, %v1610_v47  ;;  %v537_v6 = vpack.c.bf16 %v535_v5, %v528_v4 }
 0x2b6   :  { %v377_v60 = vpack.c.bf16 %v368_v58, %v374_v56  ;;  %v536_v62 = vpack.c.bf16 %v533_v57, %v530_v59  ;;  %v1388_v56 = vld [vmem:[%s1773_s5 + $0x40] sm:$0xff]   ;;  %v1389_v57 = vld [vmem:[%s1773_s5 + $0x48] sm:$0xff]   ;;  %v1390_v58 = vld [vmem:[%s1773_s5 + $0x30] sm:$0xff]  }
 0x2b8   :  { %1292 = vmatmul.mubr.msk.bf16.vlgmr.msra.gmra.mrb[0].mxu1 %vm184_vm6, %v377_v60 }
 0x2b9   :  { %1296 = vmatpush3.bf16.msra.mxu1 %v1562_v52  ;;  %1299 = vmatprep.mubr.msk.bf16.mxu1 %vm184_vm6, %v536_v62 }
 0x2ba   :  { %1297 = vmatprep.subr.bf16.mxu1 %v1387_v63 }
 0x2bd   :  { %1298 = vmatpush3.bf16.msra.mxu1 %v1387_v63 }
 0x2be   :  { %1303 = vmatprep.subr.bf16.mxu1 %v1388_v56 }
 0x2c4   :  { %1300 = vmatmul.mubr.msk.bf16.vlgmr.msra.gmra.mrb[0].mxu1 %vm184_vm6, %v537_v6 }
 0x2c5   :  { %1304 = vmatpush3.bf16.msra.mxu1 %v1388_v56  ;;  %v1392_v56 = vld [vmem:[%s1773_s5 + $0x50] sm:$0xff]  }
 0x2c6   :  { %1305 = vmatprep.subr.bf16.mxu1 %v1389_v57 }
 0x2c9   :  { %1306 = vmatpush3.bf16.msra.mxu1 %v1389_v57 }
 0x2ca   :  { %1311 = vmatprep.subr.bf16.mxu1 %v1390_v58 }
 0x386   :  { %v1285_v52 = vpop.f32.mrb[4].mxu0 }
 0x387   :  { %v441_v7 = vpop.f32.mrb[5].mxu0 }
 0x388   :  { %v1286_v8 = vpop.f32.mrb[6].mxu0 }
 0x389   :  { %v444_v9 = vpop.f32.mrb[7].mxu0 }
 0x397   :  { %v1301_v11 = vpop.f32.mrb[0].mxu1 }
 0x398   :  { %v1327_v13 = vadd.f32 %v1301_v11, %v1285_v52  ;;  %v595_v14 = vpop.f32.mrb[1].mxu1  ;;  %v1675_v11 = vld [vmem:[%s1776_s8] sm:$0x3] }
 0x399   :  { %v1328_v15 = vadd.f32 %v595_v14, %v441_v7  ;;  %v1302_v16 = vpop.f32.mrb[2].mxu1  ;;  %v685_v14 = vrot.slane %v1675_v11, %v1641_v1 }
 0x39a   :  { %v1329_v17 = vadd.f32 %v1302_v16, %v1286_v8  ;;  %v598_v19 = vpop.f32.mrb[3].mxu1  ;;  %v620_v25 = vadd.f32 %v1327_v13, %v617_v12 }
 0x39b   :  { %v1330_v20 = vadd.f32 %v598_v19, %v444_v9  ;;  %v618_v22 = vadd.f32 %v1328_v15, %v617_v12  ;;  %v1670_v9 = vld [vmem:[%s1775_s7] sm:$0x3] }
 0x39c   :  { %v621_v28 = vadd.f32 %v1329_v17, %v617_v12  ;;  %v628_v29 = vsel %vm184_vm6, %v620_v25, 0.0 }
 0x39d   :  { %v622_v23 = vsel %vm184_vm6, %v618_v22, 0.0  ;;  %v619_v24 = vadd.f32 %v1330_v20, %v617_v12  ;;  %v677_v12 = vrot.slane %v1670_v9, %v1641_v1 }
 0x39e   :  { %623 = vadd.xlane.f32.xlu1 %v622_v23  ;;  %v631_v30 = vsel %vm184_vm6, %v621_v28, 0.0 }
 0x39f   :  { %v625_v27 = vsel %vm184_vm6, %v619_v24, 0.0 }
 0x3a0   :  { %626 = vadd.xlane.f32.xlu0 %v625_v27 }
 0x3a2   :  { %629 = vadd.xlane.f32.xlu1 %v628_v29 }
 0x3a4   :  { %632 = vadd.xlane.f32.xlu0 %v631_v30 }
 0x42b   :  { %v624_v31 = vpop.xlane.xlu1 %623 }
 0x42c   :  { %v634_v32 = vmul.f32 0.03125, %v624_v31 }
 0x42d   :  { %v627_v34 = vpop.xlane.xlu0 %626 }
 0x42e   :  { %v638_v35 = vsub.f32 %v618_v22, %v634_v32  ;;  %v635_v36 = vmul.f32 0.03125, %v627_v34 }
 0x42f   :  { %v630_v37 = vpop.xlane.xlu1 %629 }
 0x430   :  { %v639_v39 = vsub.f32 %v619_v24, %v635_v36  ;;  %v636_v40 = vmul.f32 0.03125, %v630_v37  ;;  %v642_v41 = vmul.f32 %v638_v35, %v638_v35 }
 0x431   :  { %v633_v42 = vpop.xlane.xlu0 %632 }
 0x432   :  { %v640_v43 = vsub.f32 %v620_v25, %v636_v40  ;;  %v637_v44 = vmul.f32 0.03125, %v633_v42  ;;  %v646_v45 = vsel %vm184_vm6, %v642_v41, 0.0  ;;  %v643_v48 = vmul.f32 %v639_v39, %v639_v39 }
 0x433   :  { %647 = vadd.xlane.f32.xlu1 %v646_v45 }
 0x434   :  { %v641_v49 = vsub.f32 %v621_v28, %v637_v44  ;;  %v649_v50 = vsel %vm184_vm6, %v643_v48, 0.0  ;;  %v644_v51 = vmul.f32 %v640_v43, %v640_v43  ;;  %v1391_v44 = vld [vmem:[%s1773_s5 + $0x38] sm:$0xff]  }
 0x435   :  { %650 = vadd.xlane.f32.xlu0 %v649_v50 }
 0x436   :  { %v652_v53 = vsel %vm184_vm6, %v644_v51, 0.0  ;;  %v645_v54 = vmul.f32 %v641_v49, %v641_v49 }
 0x437   :  { %653 = vadd.xlane.f32.xlu1 %v652_v53 }
 0x438   :  { %v655_v55 = vsel %vm184_vm6, %v645_v54, 0.0 }
 0x439   :  { %656 = vadd.xlane.f32.xlu0 %v655_v55 }
 0x4c0   :  { %v648_v59 = vpop.xlane.xlu1 %647 }
 0x4c1   :  { %v658_v60 = vmul.f32 0.03125, %v648_v59 }
 0x4c2   :  { %v651_v62 = vpop.xlane.xlu0 %650 }
 0x4c3   :  { %v662_v63 = vadd.f32 1e-05, %v658_v60  ;;  %v659_v0 = vmul.f32 0.03125, %v651_v62 }
 0x4c4   :  { %v654_v3 = vpop.xlane.xlu1 %653 }
 0x4c5   :  { %1402 = vrsqrt.f32 %v662_v63  ;;  %v663_v4 = vadd.f32 1e-05, %v659_v0  ;;  %v660_v5 = vmul.f32 0.03125, %v654_v3 }
 0x4c6   :  { %v657_v6 = vpop.xlane.xlu0 %656 }
 0x4c7   :  { %1404 = vrsqrt.f32 %v663_v4  ;;  %v664_v52 = vadd.f32 1e-05, %v660_v5  ;;  %v661_v7 = vmul.f32 0.03125, %v657_v6  ;;  %v1393_v5 = vld [vmem:[%s1773_s5 + $0x58] sm:$0xff]  }
 0x4c9   :  { %1406 = vrsqrt.f32 %v664_v52  ;;  %v665_v8 = vadd.f32 1e-05, %v661_v7 }
 0x4cb   :  { %1408 = vrsqrt.f32 %v665_v8 }
 0x4cf   :  { %v1403_v13 = vpop.eup %1402 }
 0x4d0   :  { %v670_v15 = vmul.f32 %v1403_v13, %v638_v35 }
 0x4d1   :  { %v1405_v16 = vpop.eup %1404 }
 0x4d2   :  { %v678_v17 = vmul.f32 %v677_v12, %v670_v15  ;;  %v671_v19 = vmul.f32 %v1405_v16, %v639_v39 }
 0x4d3   :  { %v1407_v20 = vpop.eup %1406 }
 0x4d4   :  { %v679_v22 = vmul.f32 %v677_v12, %v671_v19  ;;  %v672_v23 = vmul.f32 %v1407_v20, %v640_v43  ;;  %v686_v24 = vadd.f32 %v685_v14, %v678_v17 }
 0x4d5   :  { %v1409_v25 = vpop.eup %1408 }
 0x4d6   :  { %v680_v27 = vmul.f32 %v677_v12, %v672_v23  ;;  %v673_v28 = vmul.f32 %v1409_v25, %v641_v49  ;;  %v687_v29 = vadd.f32 %v685_v14, %v679_v22  ;;  %v690_v30 = vmax.f32 %v686_v24, 0.0 }
 0x4d8   :  { %v688_v31 = vadd.f32 %v685_v14, %v680_v27  ;;  %v681_v32 = vmul.f32 %v677_v12, %v673_v28  ;;  %v691_v34 = vmax.f32 %v687_v29, 0.0  ;;  %v694_v1 = vmul.f32 %v690_v30, %v1583_v18 }
 0x4d9   :  { %v950_v12 = vsub.s32 1, %v1566_v61 }
 0x4da   :  { %v692_v36 = vmax.f32 %v688_v31, 0.0  ;;  %v689_v37 = vadd.f32 %v685_v14, %v681_v32  ;;  %v695_v35 = vmul.f32 %v691_v34, %v1590_v26  ;;  %v698_v45 = vrot.slane %v694_v1, 7 }
 0x4db   :  { %v858_v0 = vrot.slane %v694_v1, 1  ;;  %v951_v13 = vrot.slane %v1646_v10, %v950_v12 }
 0x4dc   :  { %v693_v40 = vmax.f32 %v689_v37, 0.0  ;;  %v717_v39 = vpack.c.bf16 %v695_v35, %v694_v1  ;;  %v696_v41 = vmul.f32 %v692_v36, %v1601_v38  ;;  %v699_v48 = vrot.slane %v695_v35, 7 }
 0x4dd   :  { %v859_v57 = vrot.slane %v695_v35, 1 }
 0x4de   :  { %1307 = vmatprep.mubr.msk.bf16.mxu1 %vm184_vm6, %v717_v39  ;;  %v697_v42 = vmul.f32 %v693_v40, %v1586_v21  ;;  %v700_v50 = vrot.slane %v696_v41, 7  ;;  %v860_v53 = vrot.slane %v696_v41, 1  ;;  %v704_v55 = vsel %vm305_vm12, %v698_v45, %v699_v48 }
 0x4df   :  { %v864_v4 = vsel %vm527_vm0, %v858_v0, %v859_v57 }
 0x4e0   :  { %v718_v43 = vpack.c.bf16 %v697_v42, %v696_v41  ;;  %v701_v49 = vrot.slane %v697_v42, 7  ;;  %v703_v60 = vsel %vm305_vm12, %v699_v48, %v700_v50  ;;  %v863_v62 = vsel %vm527_vm0, %v859_v57, %v860_v53 }
 0x4e1   :  { %v867_v63 = vmul.f32 %v863_v62, %v1610_v47  ;;  %v861_v52 = vrot.slane %v697_v42, 1 }
 0x4e2   :  { %1308 = vmatmul.mubr.msk.bf16.vlgmr.msra.gmra.mrb[4].mxu1 %vm184_vm6, %v718_v43  ;;  %v705_v51 = vsel %vm305_vm12, %v701_v49, %v698_v45 }
 0x4e3   :  { %1312 = vmatpush3.bf16.msra.mxu1 %v1390_v58  ;;  %v706_v54 = vmul.f32 %v705_v51, %v1596_v33  ;;  %v708_v33 = vmul.f32 %v703_v60, %v1608_v46  ;;  %v702_v58 = vsel %vm305_vm12, %v700_v50, %v701_v49  ;;  %v870_v6 = vpack.c.bf16 %v867_v63, %v864_v4 }
 0x4e4   :  { %1313 = vmatprep.subr.bf16.mxu1 %v1391_v44  ;;  %v865_v46 = vsel %vm527_vm0, %v861_v52, %v858_v0  ;;  %v862_v7 = vsel %vm527_vm0, %v860_v53, %v861_v52  ;;  %v1019_v4 = vrot.slane %v1675_v11, %v950_v12 }
 0x4e5   :  { %v710_v59 = vpack.c.bf16 %v704_v55, %v706_v54  ;;  %v711_v3 = vpack.c.bf16 %v702_v58, %v708_v33  ;;  %v869_v47 = vmul.f32 %v865_v46, %v1632_v2  ;;  %v1011_v58 = vrot.slane %v1670_v9, %v950_v12 }
 0x4e7   :  { %1315 = vmatprep.mubr.msk.bf16.mxu1 %vm184_vm6, %v710_v59  ;;  %1314 = vmatpush3.bf16.msra.mxu1 %v1391_v44  ;;  %v871_v8 = vpack.c.bf16 %v869_v47, %v862_v7 }
 0x4e8   :  { %1319 = vmatprep.subr.bf16.mxu1 %v1392_v56 }
 0x4ee   :  { %1316 = vmatmul.mubr.msk.bf16.vlgmr.msra.gmra.mrb[4].mxu1 %vm184_vm6, %v711_v3 }
 0x4ef   :  { %1320 = vmatpush3.bf16.msra.mxu1 %v1392_v56  ;;  %1323 = vmatprep.mubr.msk.bf16.mxu1 %vm184_vm6, %v870_v6 }
 0x4f0   :  { %1321 = vmatprep.subr.bf16.mxu1 %v1393_v5 }
 0x4f3   :  { %1322 = vmatpush3.bf16.msra.mxu1 %v1393_v5 }
 0x4fa   :  { %1324 = vmatmul.mubr.msk.bf16.vlgmr.msra.gmra.mrb[4].mxu1 %vm184_vm6, %v871_v8 }
 0x5cd   :  { %v1325_v14 = vpop.f32.mrb[4].mxu1 }
 0x5ce   :  { %v954_v15 = vadd.f32 %v1325_v14, %v951_v13  ;;  %v929_v16 = vpop.f32.mrb[5].mxu1 }
 0x5cf   :  { %v952_v17 = vadd.f32 %v951_v13, %v929_v16  ;;  %v1326_v19 = vpop.f32.mrb[6].mxu1 }
 0x5d0   :  { %v955_v20 = vadd.f32 %v1326_v19, %v951_v13  ;;  %v932_v22 = vpop.f32.mrb[7].mxu1  ;;  %v962_v23 = vsel %vm184_vm6, %v954_v15, 0.0 }
 0x5d1   :  { %v953_v2 = vadd.f32 %v951_v13, %v932_v22  ;;  %963 = vadd.xlane.f32.xlu0 %v962_v23  ;;  %v956_v24 = vsel %vm184_vm6, %v952_v17, 0.0 }
 0x5d2   :  { %957 = vadd.xlane.f32.xlu1 %v956_v24  ;;  %v965_v25 = vsel %vm184_vm6, %v955_v20, 0.0 }
 0x5d3   :  { %v959_v61 = vsel %vm184_vm6, %v953_v2, 0.0 }
 0x5d5   :  { %966 = vadd.xlane.f32.xlu0 %v965_v25 }
 0x5d6   :  { %960 = vadd.xlane.f32.xlu1 %v959_v61 }
 0x65e   :  { %v964_v10 = vpop.xlane.xlu0 %963 }
 0x65f   :  { %v970_v27 = vmul.f32 0.03125, %v964_v10  ;;  %v958_v28 = vpop.xlane.xlu1 %957 }
 0x660   :  { %v968_v29 = vmul.f32 0.03125, %v958_v28 }
 0x661   :  { %v974_v30 = vsub.f32 %v954_v15, %v970_v27 }
 0x662   :  { %v972_v31 = vsub.f32 %v952_v17, %v968_v29  ;;  %v967_v32 = vpop.xlane.xlu0 %966 }
 0x663   :  { %v971_v34 = vmul.f32 0.03125, %v967_v32  ;;  %v961_v36 = vpop.xlane.xlu1 %960  ;;  %v978_v37 = vmul.f32 %v974_v30, %v974_v30 }
 0x664   :  { %v969_v1 = vmul.f32 0.03125, %v961_v36  ;;  %v976_v35 = vmul.f32 %v972_v31, %v972_v31 }
 0x665   :  { %v975_v40 = vsub.f32 %v955_v20, %v971_v34  ;;  %v986_v39 = vsel %vm184_vm6, %v978_v37, 0.0 }
 0x666   :  { %v973_v41 = vsub.f32 %v953_v2, %v969_v1  ;;  %987 = vadd.xlane.f32.xlu0 %v986_v39  ;;  %v980_v42 = vsel %vm184_vm6, %v976_v35, 0.0 }
 0x667   :  { %981 = vadd.xlane.f32.xlu1 %v980_v42  ;;  %v979_v43 = vmul.f32 %v975_v40, %v975_v40 }
 0x668   :  { %v977_v44 = vmul.f32 %v973_v41, %v973_v41 }
 0x669   :  { %v989_v45 = vsel %vm184_vm6, %v979_v43, 0.0 }
 0x66a   :  { %990 = vadd.xlane.f32.xlu0 %v989_v45  ;;  %v983_v48 = vsel %vm184_vm6, %v977_v44, 0.0 }
 0x66b   :  { %984 = vadd.xlane.f32.xlu1 %v983_v48 }
 0x6f3   :  { %v988_v49 = vpop.xlane.xlu0 %987 }
 0x6f4   :  { %v994_v50 = vmul.f32 0.03125, %v988_v49  ;;  %v982_v51 = vpop.xlane.xlu1 %981 }
 0x6f5   :  { %v992_v53 = vmul.f32 0.03125, %v982_v51 }
 0x6f6   :  { %v998_v54 = vadd.f32 1e-05, %v994_v50 }
 0x6f7   :  { %v996_v55 = vadd.f32 1e-05, %v992_v53  ;;  %v991_v56 = vpop.xlane.xlu0 %990 }
 0x6f8   :  { %1410 = vrsqrt.f32 %v998_v54  ;;  %v995_v57 = vmul.f32 0.03125, %v991_v56  ;;  %v985_v59 = vpop.xlane.xlu1 %984 }
 0x6f9   :  { %1412 = vrsqrt.f32 %v996_v55  ;;  %v993_v60 = vmul.f32 0.03125, %v985_v59 }
 0x6fa   :  { %v999_v62 = vadd.f32 1e-05, %v995_v57 }
 0x6fb   :  { %v997_v33 = vadd.f32 1e-05, %v993_v60 }
 0x6fc   :  { %1414 = vrsqrt.f32 %v999_v62 }
 0x6fd   :  { %1416 = vrsqrt.f32 %v997_v33 }
 0x702   :  { %v1411_v63 = vpop.eup %1410 }
 0x703   :  { %v1413_v0 = vpop.eup %1412  ;;  %v1006_v3 = vmul.f32 %v1411_v63, %v974_v30 }
 0x704   :  { %v1004_v5 = vmul.f32 %v1413_v0, %v972_v31 }
 0x705   :  { %v1014_v6 = vmul.f32 %v1011_v58, %v1006_v3 }
 0x706   :  { %v1415_v52 = vpop.eup %1414  ;;  %v1012_v46 = vmul.f32 %v1011_v58, %v1004_v5 }
 0x707   :  { %v1417_v47 = vpop.eup %1416  ;;  %v1007_v7 = vmul.f32 %v1415_v52, %v975_v40  ;;  %v1022_v8 = vadd.f32 %v1019_v4, %v1014_v6 }
 0x708   :  { %v1005_v13 = vmul.f32 %v1417_v47, %v973_v41  ;;  %v1020_v14 = vadd.f32 %v1019_v4, %v1012_v46 }
 0x709   :  { %v1015_v15 = vmul.f32 %v1011_v58, %v1007_v7  ;;  %v1026_v16 = vmax.f32 %v1022_v8, 0.0 }
 0x70a   :  { %v1024_v17 = vmax.f32 %v1020_v14, 0.0  ;;  %v1013_v19 = vmul.f32 %v1011_v58, %v1005_v13 }
 0x70b   :  { %v1030_v9 = vmul.f32 %v1026_v16, %v1601_v38  ;;  %v1023_v20 = vadd.f32 %v1019_v4, %v1015_v15 }
 0x70c   :  { %v1028_v22 = vmul.f32 %v1024_v17, %v1583_v18  ;;  %v1021_v23 = vadd.f32 %v1019_v4, %v1013_v19 }
 0x70d   :  { %v1027_v11 = vmax.f32 %v1023_v20, 0.0 }
 0x70e   :  { %v1350_v12 = vpack.i.bf16 %v1030_v9, %v1028_v22  ;;  %v1025_v2 = vmax.f32 %v1021_v23, 0.0 }
 0x70f   :  { %v1031_v24 = vmul.f32 %v1027_v11, %v1586_v21 }
 0x710   :  { %1351 = vxpose.xlu1.b32.start [1/2] (short) (narrow) %v1350_v12, 32  ;;  %v1029_v25 = vmul.f32 %v1025_v2, %v1590_v26 }
 0x712   :  { %v1352_v61 = vpack.i.bf16 %v1031_v24, %v1029_v25 }
 0x714   :  { %1353 = vxpose.xlu1.b32.end [2/2] (short) (narrow) %v1352_v61, 32 }
 0x790   :  { %v1354_v10 = vpop.trf.xlu1 }
 0x791   :  { %v1358_v27 = vunpack.i.h.bf16 %v1354_v10  ;;  %v1355_v28 = vunpack.i.l.bf16 %v1354_v10 }
 0x793   :  { %v1221_v29 = vpack.c.bf16 %v1358_v27, %v1358_v27  ;;  %v1217_v38 = vpack.c.bf16 %v1355_v28, %v1355_v28 }
 0x794   :  { %v1359_v30 = vpop.trf.xlu1 }
 0x795   :  { %1213 = vst.msk [vmem:[%s1777_s9 + $0x10] sm:$0xf] %vm1080_vm2, %v1221_v29  ;;  %1081 = vst.msk [vmem:[%s1777_s9] sm:$0xf] %vm1080_vm2, %v1217_v38  ;;  %v1363_v18 = vunpack.i.h.bf16 %v1359_v30  ;;  %v1360_v21 = vunpack.i.l.bf16 %v1359_v30 }
 0x797   :  { %v1222_v26 = vpack.c.bf16 %v1363_v18, %v1363_v18  ;;  %v1218_v31 = vpack.c.bf16 %v1360_v21, %v1360_v21 }
 0x798   :  { %v1364_v32 = vpop.trf.xlu1 }
 0x799   :  { %1214 = vst.msk [vmem:[%s1777_s9 + $0x14] sm:$0xf] %vm1080_vm2, %v1222_v26  ;;  %1082 = vst.msk [vmem:[%s1777_s9 + $0x4] sm:$0xf] %vm1080_vm2, %v1218_v31  ;;  %v1368_v34 = vunpack.i.h.bf16 %v1364_v32  ;;  %v1365_v36 = vunpack.i.l.bf16 %v1364_v32 }
 0x79b   :  { %v1223_v37 = vpack.c.bf16 %v1368_v34, %v1368_v34  ;;  %v1219_v1 = vpack.c.bf16 %v1365_v36, %v1365_v36 }
 0x79c   :  { %v1369_v35 = vpop.trf.xlu1 }
 0x79d   :  { %1215 = vst.msk [vmem:[%s1777_s9 + $0x18] sm:$0xf] %vm1080_vm2, %v1223_v37  ;;  %1083 = vst.msk [vmem:[%s1777_s9 + $0x8] sm:$0xf] %vm1080_vm2, %v1219_v1  ;;  %v1373_v40 = vunpack.i.h.bf16 %v1369_v35  ;;  %v1370_v39 = vunpack.i.l.bf16 %v1369_v35 }
 0x79f   :  { %v1224_v41 = vpack.c.bf16 %v1373_v40, %v1373_v40  ;;  %v1220_v42 = vpack.c.bf16 %v1370_v39, %v1370_v39 }
 0x7a1   :  { %1216 = vst.msk [vmem:[%s1777_s9 + $0x1c] sm:$0xf] %vm1080_vm2, %v1224_v41  ;;  %1084 = vst.msk [vmem:[%s1777_s9 + $0xc] sm:$0xf] %vm1080_vm2, %v1220_v42 }

</bundles_post_ra>
